<compile_context>
chip_gen: v5e
topology: v5e:2x2
jax: 0.10.0
libtpu: 0.0.40
codegen_flags: <defaults>
</compile_context>

<pallas_src>
import functools

import jax
import jax.numpy as jnp
from jax.experimental import pallas as pl
from jax.experimental.pallas import tpu as pltpu


def _cdiv(a, b):
    return -(-a // b)


def _round_up(a, b):
    return _cdiv(a, b) * b


def cnn_kernel(x_ref, wq_ref, bq_ref, wl_ref, bl_ref, o_ref, *, mac_dtype):
    # x_ref:  (L, Bt)  VMEM  input tile, sequence on sublanes, batch on lanes
    # wq_ref: (K, C)   SMEM  quanv-surrogate 1-D conv weights (in_channels = 1)
    # bq_ref: (C,)     SMEM  conv bias
    # wl_ref: (C,)     SMEM  final nn.Linear(C, 1) weight
    # bl_ref: (1,)     SMEM  final nn.Linear bias
    # o_ref:  (1, Bt)  VMEM  network output (lane-dense)
    x = x_ref[...].astype(mac_dtype)
    L, Bt = x.shape
    K, C = wq_ref.shape
    pad_l = (K - 1) // 2

    # In-kernel 'same' padding: K statically shifted copies of x built with
    # pltpu.roll (XLU slot -> effectively free here), with the wrapped edge
    # rows zeroed by a single iota mask (K-1 selects over the tile, vs the old
    # concatenate-built copies on the VPU).  taps[k][l, b] == x[l + k - pad_l, b]
    # with zeros outside [0, L).
    row = jax.lax.broadcasted_iota(jnp.int32, (L, Bt), 0)
    zero = jnp.zeros((), mac_dtype)
    taps = []
    for k in range(K):
        s = pad_l - k                                  # taps[k][l] == x[l - s]
        if s == 0:
            taps.append(x)
        else:
            r = pltpu.roll(x, shift=s % L, axis=0)     # jnp.roll semantics
            keep = (row >= s) if s > 0 else (row < L + s)
            taps.append(jnp.where(keep, r, zero))

    # Per-channel: raw conv accumulation -> max over L -> then (+bias, ReLU,
    # Linear head) applied only to the pooled (1, Bt) row.  Exact rewrite of
    # ReLU(conv+bias) -> MaxPool, since max commutes with +bias and ReLU is
    # monotone; it moves 2*C*L*Bt VALU ops onto a tile that is L times smaller.
    # TODO(synk): the parameterized quantum ansatz circuit inside QuanvLayer1D
    # has no Pallas equivalent; it is approximated by this classical 1-D conv.
    # NOTE: if C / K ever grow past this toy 4x3, switch these Python-unrolled
    # loops to lax.fori_loop(..., unroll=True) to bound code size / vreg live
    # ranges (spill-bound risk).
    y = jnp.zeros((1, Bt), jnp.float32) + bl_ref[0]
    for c in range(C):
        conv_c = taps[0] * wq_ref[0, c].astype(mac_dtype)
        for k in range(1, K):
            conv_c = conv_c + taps[k] * wq_ref[k, c].astype(mac_dtype)
        pooled_c = jnp.max(conv_c, axis=0, keepdims=True)          # MaxPool1d(L)
        pooled_c = pooled_c.astype(jnp.float32)                    # (1, Bt)
        y = y + jnp.maximum(pooled_c + bq_ref[c], 0.0) * wl_ref[c]  # ReLU + head
    o_ref[...] = y


def make_cnn_params(key, kernel_size, out_channels):
    """Deterministic parameter init (mirrors the shapes implied by __init__)."""
    k1, k2, k3, k4 = jax.random.split(key, 4)
    wq = jax.random.normal(k1, (kernel_size, out_channels), jnp.float32) * 0.5
    bq = jax.random.normal(k2, (out_channels,), jnp.float32) * 0.1
    wl = jax.random.normal(k3, (out_channels,), jnp.float32) * 0.5
    bl = jax.random.normal(k4, (1,), jnp.float32) * 0.1
    return wq, bq, wl, bl


def cnn_forward(x, params, *, out_size, b_tile=4096, mac_dtype=jnp.float32,
                time_major=False):
    """Forward pass.

    x: any array reshapeable to (-1, out_size); or, with time_major=True, an
       already-(out_size, B) slab (batch on the trailing axis) so no wrapper
       relayout happens at all.  Returns (B, 1) float32.
    mac_dtype: set to jnp.bfloat16 on v6e/v7x to pack the conv MAC chain 2x on
       the VPU (keep f32 on v5e — no bf16 VPU there).
    """
    wq, bq, wl, bl = params
    K, C = wq.shape

    if time_major:
        x_t = x.astype(jnp.float32)                    # already (L, B)
        L, B = x_t.shape
    else:
        x2 = x.reshape(-1, out_size).astype(jnp.float32)  # == x.view(-1, 1, out_size)
        B, L = x2.shape
        # The only wrapper-side HBM relayout left: one transpose so batch lands
        # on the lane axis.  For peak throughput, cache the (L, B) layout
        # upstream and call with time_major=True instead.
        x_t = x2.T
    assert L == out_size

    # Batch tile: large tiles amortize the ~0.35 us/step grid overhead; even at
    # b_tile=8192 the per-step live set is only a few MiB (well under VMEM on
    # v5e/v6e/v7x).  No padded copy of x is written — the last (or only) block
    # may be partial and Pallas masks the out-of-bounds lanes.
    bt = max(128, min(int(b_tile), _round_up(B, 128)))
    bt = _round_up(bt, 128)
    n_tiles = _cdiv(B, bt)
    if n_tiles == 1 and B > 128:
        # v7x has 2 TensorCores: give the "parallel" batch axis >= 2 grid steps
        # so both cores get work (harmless on v5e/v6e, which have 1 TC).
        bt = max(128, _round_up(_cdiv(B, 2), 128))
        n_tiles = _cdiv(B, bt)

    cp = {"dimension_semantics": ("parallel",)}
    # v5e's default scoped-VMEM limit is 16 MiB; only lift it when a very large
    # b_tile is requested (double-buffered input + K taps + conv accumulator).
    est_live = (2 * 2 + K + 3) * L * bt * 4
    if est_live > (12 << 20):
        cp["vmem_limit_bytes"] = int(min(2 * est_live, 48 << 20))

    smem = pl.BlockSpec(memory_space=pltpu.MemorySpace.SMEM)
    out = pl.pallas_call(
        functools.partial(cnn_kernel, mac_dtype=mac_dtype),
        out_shape=jax.ShapeDtypeStruct((1, B), jnp.float32),
        grid_spec=pltpu.PrefetchScalarGridSpec(
            num_scalar_prefetch=0,
            grid=(n_tiles,),
            in_specs=[
                pl.BlockSpec((L, bt), lambda i: (0, i)),   # partial last block OK
                smem,  # wq
                smem,  # bq
                smem,  # wl
                smem,  # bl
            ],
            out_specs=pl.BlockSpec((1, bt), lambda i: (0, i)),
        ),
        compiler_params=pltpu.CompilerParams(**cp),
    )(x_t, wq, bq, wl, bl)

    return out.reshape(B, 1)


def reference_forward(x, params, *, out_size, kernel_size):
    """Pure-JAX reference of the same semantics (for correctness check)."""
    wq, bq, wl, bl = params
    x2 = x.reshape(-1, out_size).astype(jnp.float32)
    pad_l = (kernel_size - 1) // 2
    pad_r = kernel_size // 2
    xp = jnp.pad(x2, ((0, 0), (pad_l, pad_r)))
    L = out_size
    acc = jnp.zeros((x2.shape[0], L, wq.shape[1]), jnp.float32)
    for k in range(kernel_size):
        acc = acc + xp[:, k:k + L][:, :, None] * wq[k][None, None, :]
    acc = jnp.maximum(acc + bq[None, None, :], 0.0)
    pooled = jnp.max(acc, axis=1)                        # (B, C)
    return pooled @ wl[:, None] + bl[0]


if __name__ == "__main__":
    # Small shapes consistent with the module's forward:
    #   out_size (sequence length) = 16, out_channels = 4, kernel_size = 3, B = 2
    out_size = 16
    out_channels = 4
    kernel_size = 3
    batch = 2

    key = jax.random.PRNGKey(0)
    kx, kp = jax.random.split(key)
    x = jax.random.normal(kx, (batch, 1, out_size), jnp.float32)  # NCL, C=1
    params = make_cnn_params(kp, kernel_size, out_channels)

    out = cnn_forward(x, params, out_size=out_size)
    out = jax.block_until_ready(out)

    ref = reference_forward(x, params, out_size=out_size, kernel_size=kernel_size)
    assert out.shape == (batch, 1)
    assert jnp.allclose(out, ref, atol=1e-5, rtol=1e-5)

    # time-major fast path: caller supplies a cached (L, B) slab -> no wrapper
    # relayout at all.  Must match the default path bit-for-bit semantics.
    x_tm = x.reshape(-1, out_size).T
    out_tm = cnn_forward(x_tm, params, out_size=out_size, time_major=True)
    out_tm = jax.block_until_ready(out_tm)
    assert jnp.allclose(out_tm, ref, atol=1e-5, rtol=1e-5)

    print("KERNEL_OK")
</pallas_src>

<mosaic_0001>
module attributes {stable_mosaic.version = 11 : i64} {
  func.func @cnn_kernel(%arg0: i32, %arg1: memref<16x128xf32, #tpu.memory_space<vmem>>, %arg2: memref<3x4xf32, #tpu.memory_space<smem>>, %arg3: memref<4xf32, #tpu.memory_space<smem>>, %arg4: memref<4xf32, #tpu.memory_space<smem>>, %arg5: memref<1xf32, #tpu.memory_space<smem>>, %arg6: memref<1x128xf32, #tpu.memory_space<vmem>>) attributes {dimension_semantics = [#tpu.dimension_semantics<parallel>], iteration_bounds = array<i64: 1>, scalar_prefetch = 0 : i64, scratch_operands = 0 : i64, tpu.core_type = #tpu.core_type<tc>, window_params = [{transform_indices = @transform_0, window_bounds = array<i64: 16, 128>}, {transform_indices = @transform_1, window_bounds = array<i64: 3, 4>}, {transform_indices = @transform_2, window_bounds = array<i64: 4>}, {transform_indices = @transform_3, window_bounds = array<i64: 4>}, {transform_indices = @transform_4, window_bounds = array<i64: 1>}, {transform_indices = @transform_5, window_bounds = array<i64: 1, 128>}]} {
    %c0 = arith.constant 0 : index
    %c0_0 = arith.constant 0 : index
    %0 = vector.load %arg1[%c0, %c0_0] : memref<16x128xf32, #tpu.memory_space<vmem>>, vector<16x128xf32>
    %1 = tpu.iota {dimensions = array<i32: 0>} : vector<16x128xi32>
    %c1_i32 = arith.constant 1 : i32
    %2 = tpu.dynamic_rotate %0 by %c1_i32 dim 0 : vector<16x128xf32>, i32 -> vector<16x128xf32>
    %c1_i32_1 = arith.constant 1 : i32
    %3 = vector.broadcast %c1_i32_1 : i32 to vector<16x128xi32>
    %4 = arith.cmpi sge, %1, %3 : vector<16x128xi32>
    %cst = arith.constant 0.000000e+00 : f32
    %5 = vector.broadcast %cst : f32 to vector<16x128xf32>
    %6 = arith.select %4, %2, %5 : vector<16x128xi1>, vector<16x128xf32>
    %c15_i32 = arith.constant 15 : i32
    %7 = tpu.dynamic_rotate %0 by %c15_i32 dim 0 : vector<16x128xf32>, i32 -> vector<16x128xf32>
    %c15_i32_2 = arith.constant 15 : i32
    %8 = vector.broadcast %c15_i32_2 : i32 to vector<16x128xi32>
    %9 = arith.cmpi slt, %1, %8 : vector<16x128xi32>
    %cst_3 = arith.constant 0.000000e+00 : f32
    %10 = vector.broadcast %cst_3 : f32 to vector<16x128xf32>
    %11 = arith.select %9, %7, %10 : vector<16x128xi1>, vector<16x128xf32>
    %cst_4 = arith.constant 0.000000e+00 : f32
    %12 = vector.broadcast %cst_4 : f32 to vector<1x128xf32>
    %c0_5 = arith.constant 0 : index
    %13 = memref.load %arg5[%c0_5] : memref<1xf32, #tpu.memory_space<smem>>
    %14 = vector.broadcast %13 : f32 to vector<1x128xf32>
    %15 = arith.addf %12, %14 : vector<1x128xf32>
    %c0_6 = arith.constant 0 : index
    %c0_7 = arith.constant 0 : index
    %16 = memref.load %arg2[%c0_6, %c0_7] : memref<3x4xf32, #tpu.memory_space<smem>>
    %17 = vector.broadcast %16 : f32 to vector<16x128xf32>
    %18 = arith.mulf %6, %17 : vector<16x128xf32>
    %c1 = arith.constant 1 : index
    %c0_8 = arith.constant 0 : index
    %19 = memref.load %arg2[%c1, %c0_8] : memref<3x4xf32, #tpu.memory_space<smem>>
    %20 = vector.broadcast %19 : f32 to vector<16x128xf32>
    %21 = arith.mulf %0, %20 : vector<16x128xf32>
    %22 = arith.addf %18, %21 : vector<16x128xf32>
    %c2 = arith.constant 2 : index
    %c0_9 = arith.constant 0 : index
    %23 = memref.load %arg2[%c2, %c0_9] : memref<3x4xf32, #tpu.memory_space<smem>>
    %24 = vector.broadcast %23 : f32 to vector<16x128xf32>
    %25 = arith.mulf %11, %24 : vector<16x128xf32>
    %26 = arith.addf %22, %25 : vector<16x128xf32>
    %cst_10 = arith.constant dense<0xFF800000> : vector<128xf32>
    %27 = vector.multi_reduction <maximumf>, %26, %cst_10 [0] : vector<16x128xf32> to vector<128xf32>
    %28 = vector.shape_cast %27 : vector<128xf32> to vector<1x128xf32>
    %c0_11 = arith.constant 0 : index
    %29 = memref.load %arg3[%c0_11] : memref<4xf32, #tpu.memory_space<smem>>
    %30 = vector.broadcast %29 : f32 to vector<1x128xf32>
    %31 = arith.addf %28, %30 : vector<1x128xf32>
    %cst_12 = arith.constant 0.000000e+00 : f32
    %32 = vector.broadcast %cst_12 : f32 to vector<1x128xf32>
    %33 = arith.maximumf %31, %32 : vector<1x128xf32>
    %c0_13 = arith.constant 0 : index
    %34 = memref.load %arg4[%c0_13] : memref<4xf32, #tpu.memory_space<smem>>
    %35 = vector.broadcast %34 : f32 to vector<1x128xf32>
    %36 = arith.mulf %33, %35 : vector<1x128xf32>
    %37 = arith.addf %15, %36 : vector<1x128xf32>
    %c0_14 = arith.constant 0 : index
    %c1_15 = arith.constant 1 : index
    %38 = memref.load %arg2[%c0_14, %c1_15] : memref<3x4xf32, #tpu.memory_space<smem>>
    %39 = vector.broadcast %38 : f32 to vector<16x128xf32>
    %40 = arith.mulf %6, %39 : vector<16x128xf32>
    %c1_16 = arith.constant 1 : index
    %c1_17 = arith.constant 1 : index
    %41 = memref.load %arg2[%c1_16, %c1_17] : memref<3x4xf32, #tpu.memory_space<smem>>
    %42 = vector.broadcast %41 : f32 to vector<16x128xf32>
    %43 = arith.mulf %0, %42 : vector<16x128xf32>
    %44 = arith.addf %40, %43 : vector<16x128xf32>
    %c2_18 = arith.constant 2 : index
    %c1_19 = arith.constant 1 : index
    %45 = memref.load %arg2[%c2_18, %c1_19] : memref<3x4xf32, #tpu.memory_space<smem>>
    %46 = vector.broadcast %45 : f32 to vector<16x128xf32>
    %47 = arith.mulf %11, %46 : vector<16x128xf32>
    %48 = arith.addf %44, %47 : vector<16x128xf32>
    %cst_20 = arith.constant dense<0xFF800000> : vector<128xf32>
    %49 = vector.multi_reduction <maximumf>, %48, %cst_20 [0] : vector<16x128xf32> to vector<128xf32>
    %50 = vector.shape_cast %49 : vector<128xf32> to vector<1x128xf32>
    %c1_21 = arith.constant 1 : index
    %51 = memref.load %arg3[%c1_21] : memref<4xf32, #tpu.memory_space<smem>>
    %52 = vector.broadcast %51 : f32 to vector<1x128xf32>
    %53 = arith.addf %50, %52 : vector<1x128xf32>
    %cst_22 = arith.constant 0.000000e+00 : f32
    %54 = vector.broadcast %cst_22 : f32 to vector<1x128xf32>
    %55 = arith.maximumf %53, %54 : vector<1x128xf32>
    %c1_23 = arith.constant 1 : index
    %56 = memref.load %arg4[%c1_23] : memref<4xf32, #tpu.memory_space<smem>>
    %57 = vector.broadcast %56 : f32 to vector<1x128xf32>
    %58 = arith.mulf %55, %57 : vector<1x128xf32>
    %59 = arith.addf %37, %58 : vector<1x128xf32>
    %c0_24 = arith.constant 0 : index
    %c2_25 = arith.constant 2 : index
    %60 = memref.load %arg2[%c0_24, %c2_25] : memref<3x4xf32, #tpu.memory_space<smem>>
    %61 = vector.broadcast %60 : f32 to vector<16x128xf32>
    %62 = arith.mulf %6, %61 : vector<16x128xf32>
    %c1_26 = arith.constant 1 : index
    %c2_27 = arith.constant 2 : index
    %63 = memref.load %arg2[%c1_26, %c2_27] : memref<3x4xf32, #tpu.memory_space<smem>>
    %64 = vector.broadcast %63 : f32 to vector<16x128xf32>
    %65 = arith.mulf %0, %64 : vector<16x128xf32>
    %66 = arith.addf %62, %65 : vector<16x128xf32>
    %c2_28 = arith.constant 2 : index
    %c2_29 = arith.constant 2 : index
    %67 = memref.load %arg2[%c2_28, %c2_29] : memref<3x4xf32, #tpu.memory_space<smem>>
    %68 = vector.broadcast %67 : f32 to vector<16x128xf32>
    %69 = arith.mulf %11, %68 : vector<16x128xf32>
    %70 = arith.addf %66, %69 : vector<16x128xf32>
    %cst_30 = arith.constant dense<0xFF800000> : vector<128xf32>
    %71 = vector.multi_reduction <maximumf>, %70, %cst_30 [0] : vector<16x128xf32> to vector<128xf32>
    %72 = vector.shape_cast %71 : vector<128xf32> to vector<1x128xf32>
    %c2_31 = arith.constant 2 : index
    %73 = memref.load %arg3[%c2_31] : memref<4xf32, #tpu.memory_space<smem>>
    %74 = vector.broadcast %73 : f32 to vector<1x128xf32>
    %75 = arith.addf %72, %74 : vector<1x128xf32>
    %cst_32 = arith.constant 0.000000e+00 : f32
    %76 = vector.broadcast %cst_32 : f32 to vector<1x128xf32>
    %77 = arith.maximumf %75, %76 : vector<1x128xf32>
    %c2_33 = arith.constant 2 : index
    %78 = memref.load %arg4[%c2_33] : memref<4xf32, #tpu.memory_space<smem>>
    %79 = vector.broadcast %78 : f32 to vector<1x128xf32>
    %80 = arith.mulf %77, %79 : vector<1x128xf32>
    %81 = arith.addf %59, %80 : vector<1x128xf32>
    %c0_34 = arith.constant 0 : index
    %c3 = arith.constant 3 : index
    %82 = memref.load %arg2[%c0_34, %c3] : memref<3x4xf32, #tpu.memory_space<smem>>
    %83 = vector.broadcast %82 : f32 to vector<16x128xf32>
    %84 = arith.mulf %6, %83 : vector<16x128xf32>
    %c1_35 = arith.constant 1 : index
    %c3_36 = arith.constant 3 : index
    %85 = memref.load %arg2[%c1_35, %c3_36] : memref<3x4xf32, #tpu.memory_space<smem>>
    %86 = vector.broadcast %85 : f32 to vector<16x128xf32>
    %87 = arith.mulf %0, %86 : vector<16x128xf32>
    %88 = arith.addf %84, %87 : vector<16x128xf32>
    %c2_37 = arith.constant 2 : index
    %c3_38 = arith.constant 3 : index
    %89 = memref.load %arg2[%c2_37, %c3_38] : memref<3x4xf32, #tpu.memory_space<smem>>
    %90 = vector.broadcast %89 : f32 to vector<16x128xf32>
    %91 = arith.mulf %11, %90 : vector<16x128xf32>
    %92 = arith.addf %88, %91 : vector<16x128xf32>
    %cst_39 = arith.constant dense<0xFF800000> : vector<128xf32>
    %93 = vector.multi_reduction <maximumf>, %92, %cst_39 [0] : vector<16x128xf32> to vector<128xf32>
    %94 = vector.shape_cast %93 : vector<128xf32> to vector<1x128xf32>
    %c3_40 = arith.constant 3 : index
    %95 = memref.load %arg3[%c3_40] : memref<4xf32, #tpu.memory_space<smem>>
    %96 = vector.broadcast %95 : f32 to vector<1x128xf32>
    %97 = arith.addf %94, %96 : vector<1x128xf32>
    %cst_41 = arith.constant 0.000000e+00 : f32
    %98 = vector.broadcast %cst_41 : f32 to vector<1x128xf32>
    %99 = arith.maximumf %97, %98 : vector<1x128xf32>
    %c3_42 = arith.constant 3 : index
    %100 = memref.load %arg4[%c3_42] : memref<4xf32, #tpu.memory_space<smem>>
    %101 = vector.broadcast %100 : f32 to vector<1x128xf32>
    %102 = arith.mulf %99, %101 : vector<1x128xf32>
    %103 = arith.addf %81, %102 : vector<1x128xf32>
    %c0_43 = arith.constant 0 : index
    %c0_44 = arith.constant 0 : index
    %104 = vector.load %arg6[%c0_43, %c0_44] : memref<1x128xf32, #tpu.memory_space<vmem>>, vector<1x128xf32>
    tpu.vector_store %arg6[%c0_43, %c0_44], %103 {strides = array<i32>} : memref<1x128xf32, #tpu.memory_space<vmem>>, vector<1x128xf32>,
    return
  }
  func.func @transform_0(%arg0: i32) -> (i32, i32) {
    %c0_i32 = arith.constant 0 : i32
    %c0_i32_0 = arith.constant 0 : i32
    return %c0_i32, %arg0 : i32, i32
  }
  func.func @transform_1(%arg0: i32) -> (i32, i32) {
    %c0_i32 = arith.constant 0 : i32
    %c0_i32_0 = arith.constant 0 : i32
    %c0_i32_1 = arith.constant 0 : i32
    return %c0_i32, %c0_i32_0 : i32, i32
  }
  func.func @transform_2(%arg0: i32) -> i32 {
    %c0_i32 = arith.constant 0 : i32
    %c0_i32_0 = arith.constant 0 : i32
    return %c0_i32 : i32
  }
  func.func @transform_3(%arg0: i32) -> i32 {
    %c0_i32 = arith.constant 0 : i32
    %c0_i32_0 = arith.constant 0 : i32
    return %c0_i32 : i32
  }
  func.func @transform_4(%arg0: i32) -> i32 {
    %c0_i32 = arith.constant 0 : i32
    %c0_i32_0 = arith.constant 0 : i32
    return %c0_i32 : i32
  }
  func.func @transform_5(%arg0: i32) -> (i32, i32) {
    %c0_i32 = arith.constant 0 : i32
    %c0_i32_0 = arith.constant 0 : i32
    return %c0_i32, %arg0 : i32, i32
  }
}

</mosaic_0001>

<bundles_post_ra>
// kernel: tpu_custom_call.1
= control target key start
LH: loop header
LB: loop body
LE: loop exit
PB: predicated region body
PF: predicated region fallthrough
CT: control target
= control target key end

     0   :  { %11 = vsyncpa [#allocation5], 0  ;;  %s421_s0 = inlined_call_operand.vmem [shape: f32[16,2], index: 0, kind: input, shape index: {}]   ;;  %s422_s1 = inlined_call_operand.vmem [shape: f32[3,4], index: 1, kind: input, shape index: {}]   ;;  %s423_s2 = inlined_call_operand.vmem [shape: f32[4], index: 2, kind: input, shape index: {}]   ;;  %s424_s3 = inlined_call_operand.vmem [shape: f32[4], index: 3, kind: input, shape index: {}]   ;;  %s425_s4 = inlined_call_operand.<no memory space> [shape: f32[1], index: 4, kind: input, shape index: {}]   ;;  %s426_s5 = inlined_call_operand.hbm [shape: f32[1,2], index: 5, kind: output, shape index: {}]  }
   0x1   :  { %12 = vsyncpa [#allocation7], 0  ;;  %s30_s20 = sshll.u32 %s423_s2, 4  ;;  %s31_s20 = int_to_ptr.vmem [resolvable:$true] %s30_s20 }
   0x2   :  { %13 = vsyncpa [#allocation4], 0  ;;  %s21_s23 = sshll.u32 %s422_s1, 4  ;;  %s314_s24 = smov [#allocation6]   ;;  %s22_s23 = int_to_ptr.vmem [resolvable:$true] %s21_s23 }
   0x3   :  { %33 = dma.vmem_to_smem %s31_s20, 16, %s314_s24, [#allocation7]  }
   0x4   :  { %s315_s25 = smov [#allocation3]   ;;  %s39_s28 = sshll.u32 %s424_s3, 4  ;;  %s40_s28 = int_to_ptr.vmem [resolvable:$true] %s39_s28 }
   0x5   :  { %24 = dma.vmem_to_smem %s22_s23, 64, %s315_s25, [#allocation5]  }
   0x6   :  { %s316_s29 = smov [#allocation8]  }
   0x7   :  { %42 = dma.vmem_to_smem %s40_s28, 16, %s316_s29, [#allocation7]  }
   0x8   :  { %308 = dma.done.wait [#allocation5], 64  }
   0x9   :  { %309 = vsyncadd [#allocation5], 4294967232 }
   0xa   :  { %310 = dma.done.wait [#allocation7], 32  }
   0xb   :  { %311 = vsyncadd [#allocation7], 4294967264 }
   0xc   :  { %57 = sfence }
   0xd   :  { %v360_v0 = vld [vmem:[%s421_s0] sm:$0xff]  ;;  %v365_v1 = vld [vmem:[%s421_s0 + $0x8] sm:$0xff]  ;;  %v60_v2 = vlaneseq  ;;  %s84_s3 = sld [smem:[#allocation3]]  ;;  %s216_s2 = sshll.u32 %s426_s5, 4  ;;  %s217_s2 = int_to_ptr.hbm [resolvable:$true] %s216_s2 }
   0xe   :  { %v63_v3 = vrot.slane %v360_v0, 7  ;;  %v64_v4 = vrot.slane %v365_v1, 7  ;;  %v72_v5 = vrot.slane %v360_v0, 1  ;;  %v73_v6 = vrot.slane %v365_v1, 1  ;;  %s227_s7 = sld [smem:[#allocation3 + $0x80]] }
   0xf   :  { %v61_v7 = vshrl.u32 %v60_v2, 7  ;;  %s228_s8 = sld [smem:[#allocation3 + $0x100]] }
  0x10   :  { %s229_s0 = sld [smem:[#allocation3 + $0x1]] }
  0x11   :  { %v62_v8 = vadd.s32 8, %v61_v7  ;;  %vm65_vm0 = vcmp.lt.s32.totalorder %v61_v7, 1  ;;  %vm68_vm1 = vcmp.ge.s32.totalorder %v61_v7, 1  ;;  %vm74_vm2 = vcmp.lt.s32.totalorder %v61_v7, 7  ;;  %s230_s9 = sld [smem:[#allocation3 + $0x81]] }
  0x12   :  { %v371_v9 = vsel %vm65_vm0, %v63_v3, %v64_v4  ;;  %v67_v10 = vsel %vm65_vm0, %v64_v4, %v63_v3  ;;  %v76_v11 = vsel %vm74_vm2, %v73_v6, %v72_v5  ;;  %v373_v13 = vsel %vm74_vm2, %v72_v5, %v73_v6  ;;  %s231_s10 = sld [smem:[#allocation3 + $0x101]] }
  0x13   :  { %v70_v12 = vsel %vm68_vm1, %v67_v10, 0.0  ;;  %vm78_vm3 = vcmp.lt.s32.totalorder %v62_v8, 15  ;;  %v85_v14 = vstv %s84_s3  ;;  %s234_s11 = sld [smem:[#allocation3 + $0x2]] }
  0x14   :  { %v375_v15 = vsel %vm78_vm3, %v76_v11, 0.0  ;;  %v86_v16 = vmul.f32 %v85_v14, %v70_v12  ;;  %v87_v17 = vmul.f32 %v85_v14, %v371_v9  ;;  %v89_v18 = vstv %s227_s7  ;;  %s235_s12 = sld [smem:[#allocation3 + $0x82]] }
  0x15   :  { %v90_v19 = vmul.f32 %v89_v18, %v360_v0  ;;  %v91_v20 = vmul.f32 %v89_v18, %v365_v1  ;;  %v95_v21 = vstv %s228_s8  ;;  %s236_s13 = sld [smem:[#allocation3 + $0x102]] }
  0x16   :  { %v96_v22 = vmul.f32 %v95_v21, %v373_v13  ;;  %v97_v23 = vmul.f32 %v95_v21, %v375_v15  ;;  %v116_v26 = vstv %s229_s0  ;;  %s383_s14 = sld [smem:[#allocation6]] }
  0x17   :  { %v92_v24 = vadd.f32 %v90_v19, %v86_v16  ;;  %v93_v25 = vadd.f32 %v91_v20, %v87_v17  ;;  %v117_v29 = vmul.f32 %v116_v26, %v70_v12  ;;  %v118_v30 = vmul.f32 %v116_v26, %v371_v9  ;;  %s239_s15 = sld [smem:[#allocation3 + $0x3]] }
  0x18   :  { %v120_v31 = vstv %s230_s9  ;;  %v126_v32 = vstv %s231_s10  ;;  %s389_s16 = sld [smem:[#allocation3 + $0x83]] }
  0x19   :  { %v98_v27 = vadd.f32 %v96_v22, %v92_v24  ;;  %v99_v28 = vadd.f32 %v97_v23, %v93_v25  ;;  %v121_v34 = vmul.f32 %v120_v31, %v360_v0  ;;  %v122_v35 = vmul.f32 %v120_v31, %v365_v1  ;;  %s392_s17 = sld [smem:[#allocation3 + $0x103]] }
  0x1a   :  { %v127_v36 = vmul.f32 %v126_v32, %v373_v13  ;;  %v128_v37 = vmul.f32 %v126_v32, %v375_v15  ;;  %v147_v41 = vstv %s234_s11  ;;  %v151_v44 = vstv %s235_s12  ;;  %s398_s18 = sld [smem:[#allocation8]] }
  0x1b   :  { %v100_v33 = vmax.f32 %v98_v27, %v99_v28  ;;  %v123_v39 = vadd.f32 %v121_v34, %v117_v29  ;;  %v124_v40 = vadd.f32 %v122_v35, %v118_v30  ;;  %v148_v42 = vmul.f32 %v147_v41, %v70_v12  ;;  %s400_s19 = sld [smem:[#allocation6 + $0x1]] }
  0x1c   :  { %v149_v43 = vmul.f32 %v147_v41, %v371_v9  ;;  %v152_v48 = vmul.f32 %v151_v44, %v360_v0  ;;  %v153_v49 = vmul.f32 %v151_v44, %v365_v1  ;;  %v157_v50 = vstv %s236_s13  ;;  %s410_s20 = sld [smem:[#allocation8 + $0x1]] }
  0x1d   :  { %v101_v38 = vrot.slane %v100_v33, 4  ;;  %v129_v46 = vadd.f32 %v127_v36, %v123_v39  ;;  %v130_v47 = vadd.f32 %v128_v37, %v124_v40  ;;  %v158_v54 = vmul.f32 %v157_v50, %v373_v13  ;;  %s237_s21 = sld [smem:[#allocation6 + $0x2]] }
  0x1e   :  { %v154_v53 = vadd.f32 %v152_v48, %v148_v42  ;;  %v155_v55 = vadd.f32 %v153_v49, %v149_v43  ;;  %v159_v56 = vmul.f32 %v157_v50, %v375_v15  ;;  %v178_v57 = vstv %s239_s15  ;;  %s238_s22 = sld [smem:[#allocation8 + $0x2]] }
  0x1f   :  { %v102_v45 = vmax.f32 %v100_v33, %v101_v38  ;;  %v131_v52 = vmax.f32 %v129_v46, %v130_v47  ;;  %v179_v61 = vmul.f32 %v178_v57, %v70_v12  ;;  %v180_v63 = vmul.f32 %v178_v57, %v371_v9  ;;  %s242_s23 = sld [smem:[#allocation6 + $0x3]] }
  0x20   :  { %v160_v60 = vadd.f32 %v158_v54, %v154_v53  ;;  %v161_v62 = vadd.f32 %v159_v56, %v155_v55  ;;  %v182_v2 = vstv %s389_s16  ;;  %v188_v3 = vstv %s392_s17  ;;  %s243_s26 = sld [smem:[#allocation8 + $0x3]] }
  0x21   :  { %v103_v51 = vrot.slane %v102_v45, 2  ;;  %v132_v59 = vrot.slane %v131_v52, 4  ;;  %v183_v6 = vmul.f32 %v182_v2, %v360_v0  ;;  %v184_v7 = vmul.f32 %v182_v2, %v365_v1 }
  0x22   :  { %v108_v8 = vstv %s383_s14  ;;  %v162_v10 = vmax.f32 %v160_v60, %v161_v62  ;;  %v189_v11 = vmul.f32 %v188_v3, %v373_v13  ;;  %v190_v14 = vmul.f32 %v188_v3, %v375_v15 }
  0x23   :  { %v104_v58 = vmax.f32 %v102_v45, %v103_v51  ;;  %v133_v5 = vmax.f32 %v131_v52, %v132_v59  ;;  %v185_v17 = vadd.f32 %v183_v6, %v179_v61  ;;  %v186_v9 = vadd.f32 %v184_v7, %v180_v63 }
  0x24   :  { %v163_v18 = vrot.slane %v162_v10, 4  ;;  %v112_v15 = vstv %s398_s18  ;;  %v139_v24 = vstv %s400_s19  ;;  %v82_v32 = vstv %s425_s4  ;;  %s317_s4 = smov [#allocation9]  }
  0x25   :  { %v105_v4 = vrot.slane %v104_v58, 1  ;;  %v134_v16 = vrot.slane %v133_v5, 2  ;;  %v191_v0 = vadd.f32 %v189_v11, %v185_v17  ;;  %v192_v1 = vadd.f32 %v190_v14, %v186_v9  ;;  %s214_s27 = sshll.u32 %s317_s4, 4  ;;  %s215_s27 = int_to_ptr.vmem [resolvable:$true] %s214_s27 }
  0x26   :  { %v164_v21 = vmax.f32 %v162_v10, %v163_v18  ;;  %v143_v33 = vstv %s410_s20  ;;  %v170_v36 = vstv %s237_s21  ;;  %v174_v43 = vstv %s238_s22 }
  0x27   :  { %v106_v12 = vmax.f32 %v104_v58, %v105_v4  ;;  %v135_v20 = vmax.f32 %v133_v5, %v134_v16  ;;  %v193_v23 = vmax.f32 %v191_v0, %v192_v1  ;;  %v201_v46 = vstv %s242_s23 }
  0x28   :  { %v165_v25 = vrot.slane %v164_v21, 2  ;;  %v205_v51 = vstv %s243_s26 }
  0x29   :  { %v109_v19 = vadd.f32 %v108_v8, %v106_v12  ;;  %v136_v13 = vrot.slane %v135_v20, 1  ;;  %v194_v27 = vrot.slane %v193_v23, 4 }
  0x2a   :  { %v166_v28 = vmax.f32 %v164_v21, %v165_v25 }
  0x2b   :  { %v110_v22 = vmax.f32 %v109_v19, 0.0  ;;  %v137_v26 = vmax.f32 %v135_v20, %v136_v13  ;;  %v195_v31 = vmax.f32 %v193_v23, %v194_v27 }
  0x2c   :  { %v167_v34 = vrot.slane %v166_v28, 1 }
  0x2d   :  { %v113_v29 = vmul.f32 %v112_v15, %v110_v22  ;;  %v140_v30 = vadd.f32 %v139_v24, %v137_v26  ;;  %v196_v37 = vrot.slane %v195_v31, 2 }
  0x2e   :  { %v168_v38 = vmax.f32 %v166_v28, %v167_v34 }
  0x2f   :  { %v141_v35 = vmax.f32 %v140_v30, 0.0  ;;  %v114_v39 = vadd.f32 %v113_v29, %v82_v32  ;;  %v197_v41 = vmax.f32 %v195_v31, %v196_v37 }
  0x30   :  { %v171_v42 = vadd.f32 %v170_v36, %v168_v38 }
  0x31   :  { %v144_v40 = vmul.f32 %v143_v33, %v141_v35  ;;  %v198_v44 = vrot.slane %v197_v41, 1 }
  0x32   :  { %v172_v45 = vmax.f32 %v171_v42, 0.0 }
  0x33   :  { %v145_v47 = vadd.f32 %v144_v40, %v114_v39  ;;  %v199_v48 = vmax.f32 %v197_v41, %v198_v44 }
  0x34   :  { %v175_v49 = vmul.f32 %v174_v43, %v172_v45 }
  0x35   :  { %v202_v50 = vadd.f32 %v201_v46, %v199_v48 }
  0x36   :  { %v176_v52 = vadd.f32 %v175_v49, %v145_v47 }
  0x37   :  { %v203_v53 = vmax.f32 %v202_v50, 0.0 }
  0x39   :  { %v206_v54 = vmul.f32 %v205_v51, %v203_v53 }
  0x3b   :  { %v207_v55 = vadd.f32 %v206_v54, %v176_v52 }
  0x3d   :  { %208 = vst [vmem:[#allocation9] sm:$0x1] %v207_v55 }
  0x3e   :  { %219 = dma.vmem_to_hbm [thread:$0]  %s215_s27, 16, %s217_s2, [#allocation4]  }
  0x3f   :  { %312 = dma.done.wait [#allocation4], 16  }
  0x40   :  { %313 = vsyncadd [#allocation4], 4294967280 }
  0x41   :  { %224 = vsyncpa [#allocation4], 1 }
  0x42   :  { %225 = vsyncpa [#allocation5], 1 }
  0x43   :  { %226 = vsyncpa [#allocation7], 1 }

</bundles_post_ra>
